<compile_context>
chip_gen: v7x
topology: tpu7x:2x2x1
jax: 0.10.0
libtpu: 0.0.40
codegen_flags: <defaults>
</compile_context>

<pallas_src>
import functools
import math

import jax
import jax.numpy as jnp
from jax.experimental import pallas as pl
from jax.experimental.pallas import tpu as pltpu


# ----------------------------- helpers --------------------------------------

def _round_up(a, m):
    return (a + m - 1) // m * m


def _pad2(a, r, c):
    a = jnp.asarray(a, jnp.float32)
    return jnp.pad(a, ((0, r - a.shape[0]), (0, c - a.shape[1])))


def _pad_row(b, c):
    b = jnp.asarray(b, jnp.float32).reshape(-1)
    return jnp.pad(b, (0, c - b.shape[0])).reshape(1, -1)


def _vmem_budget_bytes():
    """Generation-aware VMEM budget with headroom for compiler scratch."""
    try:
        cap = int(pltpu.get_tpu_info().vmem_capacity_bytes)
    except Exception:
        cap = 64 * 1024 * 1024          # conservative: v7x per-TC physical
    return int(min(cap - 8 * 1024 * 1024, int(cap * 0.85)))


def _resident_spec(shape):
    """Constant-index (VMEM-resident) operand; single-buffered if supported."""
    try:
        return pl.BlockSpec(shape, lambda i: (0, 0), pipeline_mode=pl.Buffered(1))
    except TypeError:   # older jax without pipeline_mode: default buffering
        return pl.BlockSpec(shape, lambda i: (0, 0))


def _choose_tb(B, batch_tile, per_row_bytes, fixed_bytes, budget):
    # At least 2 grid steps so a dual-TC part (v7x) can shard the parallel axis.
    half = -(-B // 2)
    if half >= 256:
        tb = _round_up(half, 256)       # 256-aligned M for the 2x256x256 MXUs
    else:
        tb = _round_up(max(half, 16), 16)
    tb = min(tb, max(16, batch_tile))
    # Shrink the batch tile (never the weights) until everything fits VMEM.
    while tb > 8 and fixed_bytes + tb * per_row_bytes > budget:
        tb = max(8, _round_up(tb // 2, 8))
    num_steps = max(2, -(-B // tb))
    return tb, num_steps


# ------------------------------ kernel --------------------------------------

def _head_kernel(inv_d, x_ref, wattn_ref, battn_ref,
                 w1_ref, b1_ref, w2_ref, b2_ref,
                 g1_ref, be1_ref, gw_ref, c_ref, o_ref):
    mm_dt = wattn_ref.dtype
    x_mm = x_ref[...]                               # (TB, Dp) matmul dtype
    x = x_mm.astype(jnp.float32)

    # --- MultiheadAttention, seq_len == 1: softmax == 1, fused v/out proj ---
    attn = jnp.dot(x_mm, wattn_ref[...],
                   preferred_element_type=jnp.float32) + battn_ref[...]

    # --- residual + LayerNorm1 (padded cols are zero; true 1/D divisor) ---
    h = x + attn
    mu = jnp.sum(h, axis=-1, keepdims=True) * inv_d
    var = jnp.maximum(jnp.sum(h * h, axis=-1, keepdims=True) * inv_d - mu * mu, 0.0)
    h1 = (h - mu) * jax.lax.rsqrt(var + 1e-5) * g1_ref[...] + be1_ref[...]

    # --- FFN: Linear(D,2D) -> exact-erf GELU -> Linear(2D,D); Dropout = id ---
    ff = jnp.dot(h1.astype(mm_dt), w1_ref[...],
                 preferred_element_type=jnp.float32) + b1_ref[...]
    ff = 0.5 * ff * (1.0 + jax.lax.erf(ff * (1.0 / math.sqrt(2.0))))
    ff = jnp.dot(ff.astype(mm_dt), w2_ref[...],
                 preferred_element_type=jnp.float32) + b2_ref[...]

    # --- residual + (LayerNorm2 folded into the D->1 output head) ---
    #   out = rstd2*(sum(h*g2*wout) - mu2*sum(g2*wout)) + (sum(be2*wout)+b_out)
    h = h1 + ff
    mu2 = jnp.sum(h, axis=-1, keepdims=True) * inv_d
    var2 = jnp.maximum(jnp.sum(h * h, axis=-1, keepdims=True) * inv_d - mu2 * mu2, 0.0)
    rstd2 = jax.lax.rsqrt(var2 + 1e-5)
    gw = gw_ref[...]                                 # (1, Dp): g2 * wout (padded 0)
    sgw = jnp.sum(gw, axis=-1, keepdims=True)        # (1, 1)
    dot_hgw = jnp.sum(h * gw, axis=-1, keepdims=True)
    o_ref[...] = rstd2 * (dot_hgw - mu2 * sgw) + c_ref[...]


# ------------------------------ wrapper -------------------------------------

def transformer_task_head(x, P, *, weight_dtype=jnp.bfloat16, batch_tile=1024):
    """Forward pass of TransformerTaskHead (eval mode) as one Pallas kernel."""
    x = jnp.asarray(x, jnp.float32)
    B, D = x.shape
    Dh = 2 * D
    # Zero-pad feature dims to 128-lane multiples (full lane/MXU occupancy for
    # small D).  128 is always safe; 256 alignment would help v6e/v7x slightly.
    Dp = _round_up(max(D, 128), 128)
    Dhp = _round_up(max(Dh, 128), 128)

    # ---- host-side precompute: fuse the (dead-softmax) attention branch ----
    _wq, _wk, wv = jnp.split(P["in_proj_w"], 3, axis=0)   # q/k never needed
    _bq, _bk, bv = jnp.split(P["in_proj_b"], 3, axis=0)
    w_attn = _pad2(wv.T @ P["wo"].T, Dp, Dp).astype(weight_dtype)     # (Dp, Dp)
    b_attn = _pad_row(bv @ P["wo"].T + P["bo"], Dp)
    w1 = _pad2(P["w1"].T, Dp, Dhp).astype(weight_dtype)               # (Dp, Dhp)
    b1 = _pad_row(P["b1"], Dhp)
    w2 = _pad2(P["w2"].T, Dhp, Dp).astype(weight_dtype)               # (Dhp, Dp)
    b2 = _pad_row(P["b2"], Dp)
    g1 = _pad_row(P["g1"], Dp)
    be1 = _pad_row(P["be1"], Dp)
    # LayerNorm2 folded into the output head:
    gw = _pad_row(P["g2"] * P["wout"].reshape(-1), Dp)                # g2*wout
    c = (jnp.sum(P["be2"] * P["wout"].reshape(-1))
         + P["bout"].reshape(())).reshape(1, 1).astype(jnp.float32)

    resident_inputs = (w_attn, b_attn, w1, b1, w2, b2, g1, be1, gw, c)
    wbytes = sum(int(a.size) * a.dtype.itemsize for a in resident_inputs)

    # ---- batch tiling: >=2 grid steps, tile shrunk to the VMEM budget ----
    xi = jnp.dtype(weight_dtype).itemsize
    per_row_bytes = 2 * Dp * xi + 4 * (6 * Dp + 2 * Dhp) + 64   # x dbl-buf + temps
    fixed_bytes = wbytes + (2 << 20)                            # + compiler slack
    budget = _vmem_budget_bytes()
    TB, num_steps = _choose_tb(B, batch_tile, per_row_bytes, fixed_bytes, budget)
    Bp = num_steps * TB

    x = jnp.pad(x, ((0, Bp - B), (0, Dp - D))).astype(weight_dtype)

    act_in_spec = pl.BlockSpec((TB, Dp), lambda i: (i, 0))
    in_specs = [act_in_spec] + [_resident_spec(a.shape) for a in resident_inputs]

    cost = pl.CostEstimate(
        flops=int(2 * Bp * Dp * (Dp + 2 * Dhp) + 24 * Bp * Dp),
        transcendentals=int(Bp * Dhp + 2 * Bp),
        bytes_accessed=int(wbytes + Bp * Dp * xi + Bp * 4),
    )

    out = pl.pallas_call(
        functools.partial(_head_kernel, 1.0 / D),
        out_shape=jax.ShapeDtypeStruct((Bp, 1), jnp.float32),
        grid=(num_steps,),
        in_specs=in_specs,
        out_specs=pl.BlockSpec((TB, 1), lambda i: (i, 0)),
        compiler_params=pltpu.CompilerParams(
            dimension_semantics=("parallel",),
            vmem_limit_bytes=int(budget),
        ),
        cost_estimate=cost,
    )(x, *resident_inputs)
    return out[:B]


# --------------------------- params & reference ------------------------------

def init_params(key, D, H):
    """Deterministic synthetic parameters matching nn.Module shapes."""
    ks = jax.random.split(key, 12)
    f = lambda k, shape: 0.02 * jax.random.normal(k, shape, jnp.float32)
    return dict(
        in_proj_w=f(ks[0], (3 * D, D)),     # MultiheadAttention.in_proj_weight
        in_proj_b=f(ks[1], (3 * D,)),       # MultiheadAttention.in_proj_bias
        wo=f(ks[2], (D, D)), bo=f(ks[3], (D,)),          # out_proj
        w1=f(ks[4], (2 * D, D)), b1=f(ks[5], (2 * D,)),  # ffn[0]
        w2=f(ks[6], (D, 2 * D)), b2=f(ks[7], (D,)),      # ffn[3]
        g1=1.0 + f(ks[8], (D,)), be1=jnp.full((D,), 0.01, jnp.float32),   # norm1
        g2=1.0 + f(ks[9], (D,)), be2=jnp.full((D,), -0.01, jnp.float32),  # norm2
        wout=f(ks[10], (1, D)), bout=f(ks[11], (1,)),    # output
        H=H,
    )


def ref_forward(x, P):
    """Pure-JAX reference mirroring the PyTorch module (eval mode)."""
    B, D = x.shape
    H = P["H"]
    dh = D // H
    wq, wk, wv = jnp.split(P["in_proj_w"], 3, axis=0)
    bq, bk, bv = jnp.split(P["in_proj_b"], 3, axis=0)
    q = (x @ wq.T + bq).reshape(B, H, dh)
    k = (x @ wk.T + bk).reshape(B, H, dh)
    v = (x @ wv.T + bv).reshape(B, H, dh)
    s = jnp.einsum("bhd,bhd->bh", q / math.sqrt(dh), k)[..., None]  # (B, H, 1)
    a = jax.nn.softmax(s, axis=-1)                                  # == 1
    ctx = (a * v).reshape(B, D)
    attn = ctx @ P["wo"].T + P["bo"]

    def ln(h, g, b, eps=1e-5):
        mu = h.mean(-1, keepdims=True)
        var = ((h - mu) ** 2).mean(-1, keepdims=True)
        return (h - mu) / jnp.sqrt(var + eps) * g + b

    h1 = ln(x + attn, P["g1"], P["be1"])
    ff = jax.nn.gelu(h1 @ P["w1"].T + P["b1"], approximate=False)
    ff = ff @ P["w2"].T + P["b2"]
    h2 = ln(h1 + ff, P["g2"], P["be2"])
    return h2 @ P["wout"].T + P["bout"]


if __name__ == "__main__":
    B, D, H = 8, 32, 4
    key = jax.random.PRNGKey(0)
    kx, kp = jax.random.split(key)
    x = jax.random.normal(kx, (B, D), jnp.float32)
    P = init_params(kp, D, H)

    expected = ref_forward(x, P)

    # f32 weights + f32 activations: tight parity with the PyTorch reference.
    out = jax.block_until_ready(
        transformer_task_head(x, P, weight_dtype=jnp.float32))
    assert out.shape == (B, 1), out.shape
    assert jnp.allclose(out, expected, atol=1e-4, rtol=1e-4), (out, expected)

    # bf16 weights + bf16-streamed x (MXU-native, f32 accumulation): loose tol.
    out_bf16 = jax.block_until_ready(
        transformer_task_head(x, P, weight_dtype=jnp.bfloat16))
    assert out_bf16.shape == (B, 1), out_bf16.shape
    assert jnp.allclose(out_bf16, expected, atol=1e-2, rtol=1e-1), (out_bf16, expected)

    print("KERNEL_OK")
</pallas_src>

<mosaic_0001>
module attributes {stable_mosaic.version = 11 : i64} {
  func.func @_head_kernel(%arg0: i32, %arg1: memref<16x128xf32, #tpu.memory_space<vmem>>, %arg2: memref<128x128xf32, #tpu.memory_space<vmem>>, %arg3: memref<1x128xf32, #tpu.memory_space<vmem>>, %arg4: memref<128x128xf32, #tpu.memory_space<vmem>>, %arg5: memref<1x128xf32, #tpu.memory_space<vmem>>, %arg6: memref<128x128xf32, #tpu.memory_space<vmem>>, %arg7: memref<1x128xf32, #tpu.memory_space<vmem>>, %arg8: memref<1x128xf32, #tpu.memory_space<vmem>>, %arg9: memref<1x128xf32, #tpu.memory_space<vmem>>, %arg10: memref<1x128xf32, #tpu.memory_space<vmem>>, %arg11: memref<1x1xf32, #tpu.memory_space<vmem>>, %arg12: memref<16x1xf32, #tpu.memory_space<vmem>>) attributes {dimension_semantics = [#tpu.dimension_semantics<parallel>], iteration_bounds = array<i64: 2>, scalar_prefetch = 0 : i64, scratch_operands = 0 : i64, tpu.core_type = #tpu.core_type<tc>, window_params = [{transform_indices = @transform_0, window_bounds = array<i64: 16, 128>}, {pipeline_mode = #tpu.pipeline_mode<synchronous>, transform_indices = @transform_1, window_bounds = array<i64: 128, 128>}, {pipeline_mode = #tpu.pipeline_mode<synchronous>, transform_indices = @transform_2, window_bounds = array<i64: 1, 128>}, {pipeline_mode = #tpu.pipeline_mode<synchronous>, transform_indices = @transform_3, window_bounds = array<i64: 128, 128>}, {pipeline_mode = #tpu.pipeline_mode<synchronous>, transform_indices = @transform_4, window_bounds = array<i64: 1, 128>}, {pipeline_mode = #tpu.pipeline_mode<synchronous>, transform_indices = @transform_5, window_bounds = array<i64: 128, 128>}, {pipeline_mode = #tpu.pipeline_mode<synchronous>, transform_indices = @transform_6, window_bounds = array<i64: 1, 128>}, {pipeline_mode = #tpu.pipeline_mode<synchronous>, transform_indices = @transform_7, window_bounds = array<i64: 1, 128>}, {pipeline_mode = #tpu.pipeline_mode<synchronous>, transform_indices = @transform_8, window_bounds = array<i64: 1, 128>}, {pipeline_mode = #tpu.pipeline_mode<synchronous>, transform_indices = @transform_9, window_bounds = array<i64: 1, 128>}, {pipeline_mode = #tpu.pipeline_mode<synchronous>, transform_indices = @transform_10, window_bounds = array<i64: 1, 1>}, {transform_indices = @transform_11, window_bounds = array<i64: 16, 1>}]} {
    %c0 = arith.constant 0 : index
    %c0_0 = arith.constant 0 : index
    %0 = vector.load %arg1[%c0, %c0_0] : memref<16x128xf32, #tpu.memory_space<vmem>>, vector<16x128xf32>
    %c0_1 = arith.constant 0 : index
    %c0_2 = arith.constant 0 : index
    %1 = vector.load %arg2[%c0_1, %c0_2] : memref<128x128xf32, #tpu.memory_space<vmem>>, vector<128x128xf32>
    %cst = arith.constant dense<0.000000e+00> : vector<16x128xf32>
    %2 = tpu.matmul %0, %1, %cst {dimension_numbers = #tpu.dot_dimension_numbers<[1], [0], [0], [1], [0, 0, 1, 1], [], []>} : vector<16x128xf32>, vector<128x128xf32>, vector<16x128xf32> -> vector<16x128xf32>
    %c0_3 = arith.constant 0 : index
    %c0_4 = arith.constant 0 : index
    %3 = vector.load %arg3[%c0_3, %c0_4] : memref<1x128xf32, #tpu.memory_space<vmem>>, vector<1x128xf32>
    %4 = vector.broadcast %3 : vector<1x128xf32> to vector<16x128xf32>
    %5 = arith.addf %2, %4 : vector<16x128xf32>
    %6 = arith.addf %0, %5 : vector<16x128xf32>
    %cst_5 = arith.constant dense<0.000000e+00> : vector<16xf32>
    %7 = vector.multi_reduction <add>, %6, %cst_5 [1] : vector<16x128xf32> to vector<16xf32>
    %8 = vector.shape_cast %7 : vector<16xf32> to vector<16x1xf32>
    %cst_6 = arith.constant 3.125000e-02 : f32
    %9 = vector.broadcast %cst_6 : f32 to vector<16x1xf32>
    %10 = arith.mulf %8, %9 : vector<16x1xf32>
    %11 = arith.mulf %6, %6 : vector<16x128xf32>
    %cst_7 = arith.constant dense<0.000000e+00> : vector<16xf32>
    %12 = vector.multi_reduction <add>, %11, %cst_7 [1] : vector<16x128xf32> to vector<16xf32>
    %13 = vector.shape_cast %12 : vector<16xf32> to vector<16x1xf32>
    %cst_8 = arith.constant 3.125000e-02 : f32
    %14 = vector.broadcast %cst_8 : f32 to vector<16x1xf32>
    %15 = arith.mulf %13, %14 : vector<16x1xf32>
    %16 = arith.mulf %10, %10 : vector<16x1xf32>
    %17 = arith.subf %15, %16 : vector<16x1xf32>
    %cst_9 = arith.constant 0.000000e+00 : f32
    %18 = vector.broadcast %cst_9 : f32 to vector<16x1xf32>
    %19 = arith.maximumf %17, %18 : vector<16x1xf32>
    %20 = vector.broadcast %10 : vector<16x1xf32> to vector<16x128xf32>
    %21 = arith.subf %6, %20 : vector<16x128xf32>
    %cst_10 = arith.constant 9.99999974E-6 : f32
    %22 = vector.broadcast %cst_10 : f32 to vector<16x1xf32>
    %23 = arith.addf %19, %22 : vector<16x1xf32>
    %24 = math.rsqrt %23 : vector<16x1xf32>
    %25 = vector.broadcast %24 : vector<16x1xf32> to vector<16x128xf32>
    %26 = arith.mulf %21, %25 : vector<16x128xf32>
    %c0_11 = arith.constant 0 : index
    %c0_12 = arith.constant 0 : index
    %27 = vector.load %arg8[%c0_11, %c0_12] : memref<1x128xf32, #tpu.memory_space<vmem>>, vector<1x128xf32>
    %28 = vector.broadcast %27 : vector<1x128xf32> to vector<16x128xf32>
    %29 = arith.mulf %26, %28 : vector<16x128xf32>
    %c0_13 = arith.constant 0 : index
    %c0_14 = arith.constant 0 : index
    %30 = vector.load %arg9[%c0_13, %c0_14] : memref<1x128xf32, #tpu.memory_space<vmem>>, vector<1x128xf32>
    %31 = vector.broadcast %30 : vector<1x128xf32> to vector<16x128xf32>
    %32 = arith.addf %29, %31 : vector<16x128xf32>
    %c0_15 = arith.constant 0 : index
    %c0_16 = arith.constant 0 : index
    %33 = vector.load %arg4[%c0_15, %c0_16] : memref<128x128xf32, #tpu.memory_space<vmem>>, vector<128x128xf32>
    %cst_17 = arith.constant dense<0.000000e+00> : vector<16x128xf32>
    %34 = tpu.matmul %32, %33, %cst_17 {dimension_numbers = #tpu.dot_dimension_numbers<[1], [0], [0], [1], [0, 0, 1, 1], [], []>} : vector<16x128xf32>, vector<128x128xf32>, vector<16x128xf32> -> vector<16x128xf32>
    %c0_18 = arith.constant 0 : index
    %c0_19 = arith.constant 0 : index
    %35 = vector.load %arg5[%c0_18, %c0_19] : memref<1x128xf32, #tpu.memory_space<vmem>>, vector<1x128xf32>
    %36 = vector.broadcast %35 : vector<1x128xf32> to vector<16x128xf32>
    %37 = arith.addf %34, %36 : vector<16x128xf32>
    %cst_20 = arith.constant 5.000000e-01 : f32
    %38 = vector.broadcast %cst_20 : f32 to vector<16x128xf32>
    %39 = arith.mulf %38, %37 : vector<16x128xf32>
    %cst_21 = arith.constant 0.707106769 : f32
    %40 = vector.broadcast %cst_21 : f32 to vector<16x128xf32>
    %41 = arith.mulf %37, %40 : vector<16x128xf32>
    %42 = math.erf %41 : vector<16x128xf32>
    %cst_22 = arith.constant 1.000000e+00 : f32
    %43 = vector.broadcast %cst_22 : f32 to vector<16x128xf32>
    %44 = arith.addf %43, %42 : vector<16x128xf32>
    %45 = arith.mulf %39, %44 : vector<16x128xf32>
    %c0_23 = arith.constant 0 : index
    %c0_24 = arith.constant 0 : index
    %46 = vector.load %arg6[%c0_23, %c0_24] : memref<128x128xf32, #tpu.memory_space<vmem>>, vector<128x128xf32>
    %cst_25 = arith.constant dense<0.000000e+00> : vector<16x128xf32>
    %47 = tpu.matmul %45, %46, %cst_25 {dimension_numbers = #tpu.dot_dimension_numbers<[1], [0], [0], [1], [0, 0, 1, 1], [], []>} : vector<16x128xf32>, vector<128x128xf32>, vector<16x128xf32> -> vector<16x128xf32>
    %c0_26 = arith.constant 0 : index
    %c0_27 = arith.constant 0 : index
    %48 = vector.load %arg7[%c0_26, %c0_27] : memref<1x128xf32, #tpu.memory_space<vmem>>, vector<1x128xf32>
    %49 = vector.broadcast %48 : vector<1x128xf32> to vector<16x128xf32>
    %50 = arith.addf %47, %49 : vector<16x128xf32>
    %51 = arith.addf %32, %50 : vector<16x128xf32>
    %cst_28 = arith.constant dense<0.000000e+00> : vector<16xf32>
    %52 = vector.multi_reduction <add>, %51, %cst_28 [1] : vector<16x128xf32> to vector<16xf32>
    %53 = vector.shape_cast %52 : vector<16xf32> to vector<16x1xf32>
    %cst_29 = arith.constant 3.125000e-02 : f32
    %54 = vector.broadcast %cst_29 : f32 to vector<16x1xf32>
    %55 = arith.mulf %53, %54 : vector<16x1xf32>
    %56 = arith.mulf %51, %51 : vector<16x128xf32>
    %cst_30 = arith.constant dense<0.000000e+00> : vector<16xf32>
    %57 = vector.multi_reduction <add>, %56, %cst_30 [1] : vector<16x128xf32> to vector<16xf32>
    %58 = vector.shape_cast %57 : vector<16xf32> to vector<16x1xf32>
    %cst_31 = arith.constant 3.125000e-02 : f32
    %59 = vector.broadcast %cst_31 : f32 to vector<16x1xf32>
    %60 = arith.mulf %58, %59 : vector<16x1xf32>
    %61 = arith.mulf %55, %55 : vector<16x1xf32>
    %62 = arith.subf %60, %61 : vector<16x1xf32>
    %cst_32 = arith.constant 0.000000e+00 : f32
    %63 = vector.broadcast %cst_32 : f32 to vector<16x1xf32>
    %64 = arith.maximumf %62, %63 : vector<16x1xf32>
    %cst_33 = arith.constant 9.99999974E-6 : f32
    %65 = vector.broadcast %cst_33 : f32 to vector<16x1xf32>
    %66 = arith.addf %64, %65 : vector<16x1xf32>
    %67 = math.rsqrt %66 : vector<16x1xf32>
    %c0_34 = arith.constant 0 : index
    %c0_35 = arith.constant 0 : index
    %68 = vector.load %arg10[%c0_34, %c0_35] : memref<1x128xf32, #tpu.memory_space<vmem>>, vector<1x128xf32>
    %cst_36 = arith.constant dense<0.000000e+00> : vector<1xf32>
    %69 = vector.multi_reduction <add>, %68, %cst_36 [1] : vector<1x128xf32> to vector<1xf32>
    %70 = vector.shape_cast %69 : vector<1xf32> to vector<1x1xf32>
    %71 = vector.broadcast %68 : vector<1x128xf32> to vector<16x128xf32>
    %72 = arith.mulf %51, %71 : vector<16x128xf32>
    %cst_37 = arith.constant dense<0.000000e+00> : vector<16xf32>
    %73 = vector.multi_reduction <add>, %72, %cst_37 [1] : vector<16x128xf32> to vector<16xf32>
    %74 = vector.shape_cast %73 : vector<16xf32> to vector<16x1xf32>
    %75 = vector.broadcast %70 : vector<1x1xf32> to vector<16x1xf32>
    %76 = arith.mulf %55, %75 : vector<16x1xf32>
    %77 = arith.subf %74, %76 : vector<16x1xf32>
    %78 = arith.mulf %67, %77 : vector<16x1xf32>
    %c0_38 = arith.constant 0 : index
    %c0_39 = arith.constant 0 : index
    %79 = vector.load %arg11[%c0_38, %c0_39] : memref<1x1xf32, #tpu.memory_space<vmem>>, vector<1x1xf32>
    %80 = vector.broadcast %79 : vector<1x1xf32> to vector<16x1xf32>
    %81 = arith.addf %78, %80 : vector<16x1xf32>
    %c0_40 = arith.constant 0 : index
    %c0_41 = arith.constant 0 : index
    %82 = vector.load %arg12[%c0_40, %c0_41] : memref<16x1xf32, #tpu.memory_space<vmem>>, vector<16x1xf32>
    tpu.vector_store %arg12[%c0_40, %c0_41], %81 {strides = array<i32>} : memref<16x1xf32, #tpu.memory_space<vmem>>, vector<16x1xf32>,
    return
  }
  func.func @transform_0(%arg0: i32) -> (i32, i32) {
    %c0_i32 = arith.constant 0 : i32
    %c0_i32_0 = arith.constant 0 : i32
    return %arg0, %c0_i32 : i32, i32
  }
  func.func @transform_1(%arg0: i32) -> (i32, i32) {
    %c0_i32 = arith.constant 0 : i32
    %c0_i32_0 = arith.constant 0 : i32
    %c0_i32_1 = arith.constant 0 : i32
    return %c0_i32, %c0_i32_0 : i32, i32
  }
  func.func @transform_2(%arg0: i32) -> (i32, i32) {
    %c0_i32 = arith.constant 0 : i32
    %c0_i32_0 = arith.constant 0 : i32
    %c0_i32_1 = arith.constant 0 : i32
    return %c0_i32, %c0_i32_0 : i32, i32
  }
  func.func @transform_3(%arg0: i32) -> (i32, i32) {
    %c0_i32 = arith.constant 0 : i32
    %c0_i32_0 = arith.constant 0 : i32
    %c0_i32_1 = arith.constant 0 : i32
    return %c0_i32, %c0_i32_0 : i32, i32
  }
  func.func @transform_4(%arg0: i32) -> (i32, i32) {
    %c0_i32 = arith.constant 0 : i32
    %c0_i32_0 = arith.constant 0 : i32
    %c0_i32_1 = arith.constant 0 : i32
    return %c0_i32, %c0_i32_0 : i32, i32
  }
  func.func @transform_5(%arg0: i32) -> (i32, i32) {
    %c0_i32 = arith.constant 0 : i32
    %c0_i32_0 = arith.constant 0 : i32
    %c0_i32_1 = arith.constant 0 : i32
    return %c0_i32, %c0_i32_0 : i32, i32
  }
  func.func @transform_6(%arg0: i32) -> (i32, i32) {
    %c0_i32 = arith.constant 0 : i32
    %c0_i32_0 = arith.constant 0 : i32
    %c0_i32_1 = arith.constant 0 : i32
    return %c0_i32, %c0_i32_0 : i32, i32
  }
  func.func @transform_7(%arg0: i32) -> (i32, i32) {
    %c0_i32 = arith.constant 0 : i32
    %c0_i32_0 = arith.constant 0 : i32
    %c0_i32_1 = arith.constant 0 : i32
    return %c0_i32, %c0_i32_0 : i32, i32
  }
  func.func @transform_8(%arg0: i32) -> (i32, i32) {
    %c0_i32 = arith.constant 0 : i32
    %c0_i32_0 = arith.constant 0 : i32
    %c0_i32_1 = arith.constant 0 : i32
    return %c0_i32, %c0_i32_0 : i32, i32
  }
  func.func @transform_9(%arg0: i32) -> (i32, i32) {
    %c0_i32 = arith.constant 0 : i32
    %c0_i32_0 = arith.constant 0 : i32
    %c0_i32_1 = arith.constant 0 : i32
    return %c0_i32, %c0_i32_0 : i32, i32
  }
  func.func @transform_10(%arg0: i32) -> (i32, i32) {
    %c0_i32 = arith.constant 0 : i32
    %c0_i32_0 = arith.constant 0 : i32
    %c0_i32_1 = arith.constant 0 : i32
    return %c0_i32, %c0_i32_0 : i32, i32
  }
  func.func @transform_11(%arg0: i32) -> (i32, i32) {
    %c0_i32 = arith.constant 0 : i32
    %c0_i32_0 = arith.constant 0 : i32
    return %arg0, %c0_i32 : i32, i32
  }
}

</mosaic_0001>

<bundles_post_ra>
// kernel: tpu_custom_call.1
= control target key start
LH: loop header
LB: loop body
LE: loop exit
PB: predicated region body
PF: predicated region fallthrough
CT: control target
= control target key end

     0   :  { %s1821_s0 = inlined_call_operand.hbm [shape: f32[32,128], index: 0, kind: input, shape index: {}]   ;;  %s1822_s1 = inlined_call_operand.hbm [shape: f32[128,128], index: 1, kind: input, shape index: {}]   ;;  %s1823_s2 = inlined_call_operand.vmem [shape: f32[1,128], index: 2, kind: input, shape index: {}]   ;;  %s1824_s3 = inlined_call_operand.hbm [shape: f32[128,128], index: 3, kind: input, shape index: {}]   ;;  %s1825_s4 = inlined_call_operand.vmem [shape: f32[1,128], index: 4, kind: input, shape index: {}]   ;;  %s1826_s5 = inlined_call_operand.hbm [shape: f32[128,128], index: 5, kind: input, shape index: {}]   ;;  %s1827_s6 = inlined_call_operand.vmem [shape: f32[1,128], index: 6, kind: input, shape index: {}]   ;;  %s1828_s7 = inlined_call_operand.vmem [shape: f32[1,128], index: 7, kind: input, shape index: {}]   ;;  %s1829_s8 = inlined_call_operand.vmem [shape: f32[1,128], index: 8, kind: input, shape index: {}]   ;;  %s1830_s9 = inlined_call_operand.vmem [shape: f32[1,128], index: 9, kind: input, shape index: {}]   ;;  %s1831_s10 = inlined_call_operand.<no memory space> [shape: f32[1,1], index: 10, kind: input, shape index: {}]   ;;  %s1832_s11 = inlined_call_operand.vmem [shape: f32[32,1], index: 11, kind: output, shape index: {}]  }
   0x1   :  { %1838 = sst [smem:[#allocation13_spill]] %s1830_s9  ;;  %v16_v0 = vstv %s1831_s10 }
   0x2   :  { %1839 = sst [smem:[#allocation14_spill]] %s1832_s11  ;;  %17 = vst [vmem:[#allocation2] sm:$0x1] %v16_v0 }
   0x3   :  { %18 = vsyncpa [#allocation4], 0 }
   0x4   :  { %20 = vsyncpa [#allocation4 + $0x1], 0 }
   0x5   :  { %21 = vsyncpa [#allocation6], 0 }
   0x6   :  { %22 = vsyncpa [#allocation9], 0  ;;  %s1562_s19 = smov 0   ;;  %s1564_s20 = smov 0  }
   0x7   :  { %s1566_s21 = smov 0   ;;  %s1568_s22 = smov 0  }
   0x8 LB: > { %s1835_s10 = sadd.s32 4294967295, %s1491_s22   ;;  %p48_p0 = scmp.ne.s32.totalorder %s1483_s20, %s1479_s19  ;;  %s1491_s22 = sphi %s1568_s22, %s1856_s22   ;;  %s1487_s21 = sphi %s1566_s21, %s1855_s21   ;;  %s1483_s20 = sphi %s1564_s20, %s1854_s20   ;;  %s1479_s19 = sphi %s1562_s19, %s1853_s19  }
   0x9   : > { %p1584_p1 = scmp.eq.s32.totalorder %s1835_s10, 0  ;;  %p972_p2 = scmp.ge.s32.totalorder %s1491_s22, 1 }
   0xa   : > { %p295_p3 = scmp.lt.s32.totalorder %s1491_s22, 3  ;;  %s1493_s26 = smov [#allocation5]  }
   0xb   : > { %s1840_s23 = scalar_select %p1584_p1, 1, 0 }
   0xc   : > { %p1592_p4 = por %p1584_p1, %p48_p0  ;;  %p1596_p5 = pnand %p972_p2, %p295_p3 }
   0xd   : > { %s307_s27 = sshll.u32 %s1493_s26, 4  ;;  %s1494_s29 = smov [#allocation7]   ;;  %s1600_s27 = int_to_ptr.vmem [resolvable:$true] %s307_s27 }
   0xe   : > { %s1841_s24 = scalar_select %p1592_p4, 1, 0 }
   0xf   : > { %s1842_s25 = scalar_select %p1596_p5, 1, 0 }
  0x10   : > { %p1265_p6 = pneg %p1596_p5  ;;  %s323_s30 = sshll.u32 %s1494_s29, 4  ;;  %s1610_s30 = int_to_ptr.vmem [resolvable:$true] %s323_s30 }
  0x11   : > { %s1495_s12 = smov [#allocation8]   ;;  %s1335_s16 = scalar_lea.hbm %s1822_s1, 2048 }
  0x12   : > { %p1606_p7 = pnand %p1265_p6, %p1584_p1  ;;  %s1612_s13 = sshll.u32 %s1495_s12, 4  ;;  %s340_s13 = int_to_ptr.vmem [resolvable:$true] %s1612_s13 }
  0x13   : > { %p1336_p8 = scmp.ne.s32.totalorder %s1822_s1, %s1335_s16  ;;  %p1342_p12 = scmp.lt.u32.totalorder %s1335_s16, %s1822_s1 }
  0x14   : > { %p1622_p9 = pneg %p1606_p7 }
  0x16   : > { %p1338_p10 = pnand %p1622_p9, %p1336_p8 }
  0x18   : > { %p1339_p11 = pneg %p1338_p10 }
  0x1a   : > { %p1344_p13 = pnand %p1342_p12, %p1339_p11 }
  0x1c   : > { %1347 = shalt.err (!%p1344_p13)
}
  0x1d   : > { %s1348_s12 = scalar_lea.vmem %s1600_s27, 2048  ;;  %p1356_p6 = scmp.lt.s32.totalorder %s1600_s27, %s1600_s27 }
  0x1e   : > { %p1349_p0 = scmp.ne.s32.totalorder %s1600_s27, %s1348_s12  ;;  %p1357_p1 = scmp.lt.s32.totalorder %s1348_s12, %s1348_s12 }
  0x20   : > { %p1351_p2 = pnand %p1349_p0, %p1622_p9  ;;  %p1358_p8 = por %p1357_p1, %p1356_p6 }
  0x22   : > { %p1352_p3 = pneg %p1351_p2 }
  0x24   : > { %p1359_p10 = pnand %p1358_p8, %p1352_p3 }
  0x26   : > { %1362 = shalt.err (!%p1359_p10)
}
  0x27   : > { %s1496_s14 = smov 128   ;;  %s1497_s15 = smov 8  }
  0x28   : > { %1268 = dma.hbm_to_vmem [thread:$0]  (!%p1606_p7), %s1822_s1, 2048, %s1600_s27, [#allocation6], %s1496_s14, %s1496_s14, %s1497_s15  }
  0x29   : > { %s1363_s29 = scalar_lea.hbm %s1824_s3, 2048 }
  0x2a   : > { %p1364_p1 = scmp.ne.s32.totalorder %s1824_s3, %s1363_s29  ;;  %p1370_p13 = scmp.lt.u32.totalorder %s1363_s29, %s1824_s3 }
  0x2c   : > { %p1366_p11 = pnand %p1364_p1, %p1622_p9 }
  0x2e   : > { %p1367_p12 = pneg %p1366_p11 }
  0x30   : > { %p1372_p0 = pnand %p1370_p13, %p1367_p12 }
  0x32   : > { %1375 = shalt.err (!%p1372_p0)
}
  0x33   : > { %s1376_s27 = scalar_lea.vmem %s1610_s30, 2048  ;;  %p1384_p8 = scmp.lt.s32.totalorder %s1610_s30, %s1610_s30 }
  0x34   : > { %p1377_p2 = scmp.ne.s32.totalorder %s1610_s30, %s1376_s27  ;;  %p1385_p10 = scmp.lt.s32.totalorder %s1376_s27, %s1376_s27 }
  0x36   : > { %p1379_p3 = pnand %p1377_p2, %p1622_p9  ;;  %p1386_p1 = por %p1385_p10, %p1384_p8 }
  0x38   : > { %p1380_p6 = pneg %p1379_p3 }
  0x3a   : > { %p1387_p11 = pnand %p1386_p1, %p1380_p6 }
  0x3c   : > { %1390 = shalt.err (!%p1387_p11)
}
  0x3d   : > { %1271 = dma.hbm_to_vmem [thread:$0]  (!%p1606_p7), %s1824_s3, 2048, %s1610_s30, [#allocation6], %s1496_s14, %s1496_s14, %s1497_s15  }
  0x3e   : > { %s1391_s17 = scalar_lea.hbm %s1826_s5, 2048 }
  0x3f   : > { %p1392_p12 = scmp.ne.s32.totalorder %s1826_s5, %s1391_s17  ;;  %p1398_p2 = scmp.lt.u32.totalorder %s1391_s17, %s1826_s5 }
  0x41   : > { %p1394_p13 = pnand %p1392_p12, %p1622_p9 }
  0x43   : > { %p1395_p0 = pneg %p1394_p13 }
  0x45   : > { %p1400_p3 = pnand %p1398_p2, %p1395_p0 }
  0x47   : > { %1403 = shalt.err (!%p1400_p3)
}
  0x48   : > { %s1404_s27 = scalar_lea.vmem %s340_s13, 2048  ;;  %p1412_p1 = scmp.lt.s32.totalorder %s340_s13, %s340_s13 }
  0x49   : > { %p1405_p6 = scmp.ne.s32.totalorder %s340_s13, %s1404_s27  ;;  %p1413_p11 = scmp.lt.s32.totalorder %s1404_s27, %s1404_s27 }
  0x4b   : > { %p1407_p8 = pnand %p1405_p6, %p1622_p9  ;;  %p1414_p4 = por %p1413_p11, %p1412_p1 }
  0x4d   : > { %p1408_p10 = pneg %p1407_p8 }
  0x4f   : > { %p1415_p5 = pnand %p1414_p4, %p1408_p10 }
  0x51   : > { %1418 = shalt.err (!%p1415_p5)
}
  0x52   : > { %1274 = dma.hbm_to_vmem [thread:$0]  (!%p1606_p7), %s1826_s5, 2048, %s340_s13, [#allocation9], %s1496_s14, %s1496_s14, %s1497_s15  }
  0x53   : > { %s1695_s19 = sadd.s32 1, %s1491_s22   ;;  %s35_s11 = sadd.s32 1, %s1487_s21 }
  0x54   : > { %s32_s28 = ssub.s32 %s1491_s22, %s1695_s19  ;;  %p42_p5 = scmp.ne.s32.totalorder %s1487_s21, %s1483_s20 }
  0x55   : > { %p33_p4 = scmp.eq.s32.totalorder %s32_s28, 0  ;;  %p43_p9 = scmp.eq.s32.totalorder %s1491_s22, 0 }
  0x56   : > { %p1282_p12 = scmp.lt.s32.totalorder %s1491_s22, 2  ;;  %s368_s16 = sand.u32 1, %s1487_s21  }
  0x57   : > { %s1705_s10 = scalar_select %p33_p4, %s1487_s21, %s35_s11  }
  0x58   : > { %p44_p13 = por %p43_p9, %p42_p5  ;;  %s977_s17 = sshll.u32 %s368_s16, 4 }
  0x59   : > { %s995_s18 = sshll.u32 %s1491_s22, 8  ;;  %s372_s13 = scalar_lea.vmem [#allocation3], %s977_s17 }
  0x5a   : > { %s1712_s12 = scalar_lea.hbm %s1821_s0, %s995_s18  ;;  %s379_s27 = sshll.u32 %s372_s13, 4  ;;  %s1714_s27 = int_to_ptr.vmem [resolvable:$true] %s379_s27 }
  0x5b   : > { %p1716_p7 = pnand %p1282_p12, %p44_p13  ;;  %s1720_s9 = scalar_lea.sflag [#allocation4], %s368_s16 }
  0x5c   : > { %s1419_s28 = scalar_lea.hbm %s1712_s12, 256  ;;  %s1424_s18 = scalar_lea.hbm %s1821_s0, 512 }
  0x5d   : > { %p1420_p0 = scmp.ne.s32.totalorder %s1712_s12, %s1419_s28  ;;  %p1421_p2 = pneg %p1716_p7 }
  0x5e   : > { %p1425_p8 = scmp.lt.u32.totalorder %s1712_s12, %s1821_s0  ;;  %p1426_p10 = scmp.lt.u32.totalorder %s1424_s18, %s1419_s28 }
  0x5f   : > { %p1422_p3 = pnand %p1421_p2, %p1420_p0  ;;  %p1428_p11 = scmp.lt.u32.totalorder %s1419_s28, %s1712_s12 }
  0x60   : > { %p1427_p1 = por %p1426_p10, %p1425_p8 }
  0x61   : > { %p1423_p6 = pneg %p1422_p3 }
  0x62   : > { %p1429_p4 = por %p1428_p11, %p1427_p1 }
  0x64   : > { %p1430_p5 = pnand %p1429_p4, %p1423_p6 }
  0x66   : > { %1433 = shalt.err (!%p1430_p5)
}
  0x67   : > { %s1434_s16 = scalar_lea.vmem %s1714_s27, 256  ;;  %s1498_s13 = smov [#allocation3]  }
  0x68   : > { %p1435_p9 = scmp.ne.s32.totalorder %s1714_s27, %s1434_s16  ;;  %s1439_s11 = sshll.u32 %s1498_s13, 4  ;;  %s1440_s11 = int_to_ptr.vmem [resolvable:$false] %s1439_s11 }
  0x69   : > { %s1441_s17 = scalar_lea.vmem %s1440_s11, 512  ;;  %p1442_p0 = scmp.lt.s32.totalorder %s1714_s27, %s1440_s11 }
  0x6a   : > { %p1437_p12 = pnand %p1435_p9, %p1421_p2  ;;  %p1443_p3 = scmp.lt.s32.totalorder %s1441_s17, %s1434_s16 }
  0x6c   : > { %p1438_p13 = pneg %p1437_p12  ;;  %p1444_p8 = por %p1443_p3, %p1442_p0 }
  0x6e   : > { %p1445_p10 = pnand %p1444_p8, %p1438_p13 }
  0x70   : > { %1448 = shalt.err (!%p1445_p10)
}
  0x71   : > { %1278 = dma.hbm_to_vmem [thread:$0]  (!%p1716_p7), %s1712_s12, 256, %s1714_s27, %s1720_s9, %s1496_s14, %s1496_s14, %s1497_s15  }
  0x72   : > { %p1846_p2 = scmp.ne.s32.totalorder %s1842_s25, 0 }
  0x73   : > { %s393_s28 = sand.u32 (!%p1846_p2), 1, %s1483_s20   ;;  %p1847_p6 = scmp.ne.s32.totalorder (!%p1846_p2), %s1841_s24, 0 }
  0x74   : > { %391 = sbr.rel (%p1846_p2) target bundleno = 1174 (0x496), region = 64  ;;  %s1754_s18 = sshll.u32 (!%p1846_p2), %s393_s28, 4 }
  0x75   : > { %s394_s26 = scalar_lea.sflag (!%p1846_p2), [#allocation4], %s393_s28  ;;  %s397_s29 = scalar_lea.vmem (!%p1846_p2), [#allocation3], %s1754_s18 }
  0x7b   : > { %1466 = dma.done.wait (%p1847_p6), %s394_s26, 256  }
  0x7c   : > { %1468 = vsyncadd (%p1847_p6), %s394_s26, 4294967040  ;;  %p1848_p1 = scmp.ne.s32.totalorder %s1840_s23, 0 }
  0x7e   : > { %1470 = dma.done.wait (%p1848_p1), [#allocation6], 4096  }
  0x7f   : > { %1472 = vsyncadd (%p1848_p1), [#allocation6], 4294963200 }
  0x80   : > { %1474 = dma.done.wait (%p1848_p1), [#allocation9], 2048  }
  0x81   : > { %1476 = vsyncadd (%p1848_p1), [#allocation9], 4294965248  ;;  %v457_v1 = vld [vmem:[#allocation5] sm:$0xff]  ;;  %v458_v2 = vld [vmem:[#allocation5 + $0x8] sm:$0xff]  ;;  %s1849_s17 = sld [smem:[#allocation13_spill]]  ;;  %vm836_vm0 = vcmask 1040384  }
  0x82   : > { %v459_v3 = vld [vmem:[#allocation5 + $0x10] sm:$0xff]  ;;  %v1155_v4 = vpack.c.bf16 %v458_v2, %v457_v1  ;;  %v460_v5 = vld [vmem:[#allocation5 + $0x18] sm:$0xff]  ;;  %v461_v7 = vld [vmem:[#allocation5 + $0x20] sm:$0xff]  ;;  %s1850_s28 = sadd.s32 4294967295, %s1491_s22   ;;  %s1851_s23 = sld [smem:[#allocation14_spill]]  ;;  %vm871_vm1 = vcmask 7168  }
  0x83   : > { %v1159_v6 = vpack.c.bf16 %v460_v5, %v459_v3  ;;  %v462_v8 = vld [vmem:[#allocation5 + $0x28] sm:$0xff]  ;;  %v455_v10 = vld [vmem:[%s397_s29] sm:$0xff]  ;;  %v464_v12 = vld [vmem:[#allocation5 + $0x38] sm:$0xff]  ;;  %s985_s18 = sshll.u32 %s1850_s28, 1 }
  0x84   : > { %1156 = vmatprep.subr.bf16.mxu0 %v1155_v4  ;;  %v1163_v9 = vpack.c.bf16 %v462_v8, %v461_v7  ;;  %v463_v11 = vld [vmem:[#allocation5 + $0x30] sm:$0xff]  ;;  %1082 = vmatprep.mubr.f32.mxu0 %v455_v10  ;;  %v465_v14 = vld [vmem:[#allocation5 + $0x40] sm:$0xff]  ;;  %v466_v15 = vld [vmem:[#allocation5 + $0x48] sm:$0xff]  ;;  %p450_p7 = scmp.lt.s32.totalorder %s985_s18, 3 }
  0x85   : > { %1158 = vmatpush3.bf16.msra.mxu0 %v1155_v4  ;;  %v1167_v13 = vpack.c.bf16 %v464_v12, %v463_v11  ;;  %v1171_v16 = vpack.c.bf16 %v466_v15, %v465_v14  ;;  %v467_v17 = vld [vmem:[#allocation5 + $0x50] sm:$0xff]  ;;  %v468_v18 = vld [vmem:[#allocation5 + $0x58] sm:$0xff]  ;;  %v469_v20 = vld [vmem:[#allocation5 + $0x60] sm:$0xff] }
  0x86   : > { %1160 = vmatprep.subr.bf16.mxu0 %v1159_v6  ;;  %v1175_v19 = vpack.c.bf16 %v468_v18, %v467_v17  ;;  %v470_v21 = vld [vmem:[#allocation5 + $0x68] sm:$0xff]  ;;  %v471_v23 = vld [vmem:[#allocation5 + $0x70] sm:$0xff]  ;;  %v472_v24 = vld [vmem:[#allocation5 + $0x78] sm:$0xff]  ;;  %s1858_s18 = smov (!%p450_p7, %s985_s18), 3 }
  0x87   : > { %v1179_v22 = vpack.c.bf16 %v470_v21, %v469_v20  ;;  %v1183_v25 = vpack.c.bf16 %v472_v24, %v471_v23  ;;  %v456_v26 = vld [vmem:[%s397_s29 + $0x8] sm:$0xff]  ;;  %v603_v27 = vld [vmem:[#allocation7] sm:$0xff]  ;;  %v605_v39 = vld [vmem:[#allocation7 + $0x10] sm:$0xff]  ;;  %s986_s26 = sshll.u32 %s1858_s18, 3 }
  0x88   : > { %v604_v28 = vld [vmem:[#allocation7 + $0x8] sm:$0xff]  ;;  %v987_v30 = vld [vmem:[%s1823_s2] ss:$0 sm:$0xff]  ;;  %v607_v42 = vld [vmem:[#allocation7 + $0x20] sm:$0xff]  ;;  %s453_s24 = scalar_lea.vmem %s1851_s23, %s986_s26 }
  0x89   : > { %1162 = vmatpush3.bf16.msra.mxu0 %v1159_v6  ;;  %v1187_v29 = vpack.c.bf16 %v604_v28, %v603_v27  ;;  %v606_v40 = vld [vmem:[#allocation7 + $0x18] sm:$0xff]  ;;  %v608_v43 = vld [vmem:[#allocation7 + $0x28] sm:$0xff]  ;;  %v609_v45 = vld [vmem:[#allocation7 + $0x30] sm:$0xff] }
  0x8a   : > { %1164 = vmatprep.subr.bf16.mxu0 %v1163_v9  ;;  %v1191_v41 = vpack.c.bf16 %v606_v40, %v605_v39  ;;  %v1195_v44 = vpack.c.bf16 %v608_v43, %v607_v42  ;;  %v610_v46 = vld [vmem:[#allocation7 + $0x38] sm:$0xff]  ;;  %v611_v48 = vld [vmem:[#allocation7 + $0x40] sm:$0xff]  ;;  %v612_v49 = vld [vmem:[#allocation7 + $0x48] sm:$0xff] }
  0x8b   : > { %1188 = vmatprep.subr.bf16.mxu1 %v1187_v29  ;;  %v1199_v47 = vpack.c.bf16 %v610_v46, %v609_v45  ;;  %v1203_v50 = vpack.c.bf16 %v612_v49, %v611_v48  ;;  %v613_v51 = vld [vmem:[#allocation7 + $0x50] sm:$0xff]  ;;  %v614_v52 = vld [vmem:[#allocation7 + $0x58] sm:$0xff]  ;;  %v615_v53 = vld [vmem:[#allocation7 + $0x60] sm:$0xff] }
  0x8c   : > { %1190 = vmatpush3.bf16.msra.mxu1 %v1187_v29  ;;  %v1207_v54 = vpack.c.bf16 %v614_v52, %v613_v51  ;;  %v616_v55 = vld [vmem:[#allocation7 + $0x68] sm:$0xff]  ;;  %v617_v57 = vld [vmem:[#allocation7 + $0x70] sm:$0xff]  ;;  %v618_v58 = vld [vmem:[#allocation7 + $0x78] sm:$0xff] }
  0x8d   : > { %1166 = vmatpush3.bf16.msra.mxu0 %v1163_v9  ;;  %1192 = vmatprep.subr.bf16.mxu1 %v1191_v41  ;;  %v1211_v56 = vpack.c.bf16 %v616_v55, %v615_v53  ;;  %v1215_v59 = vpack.c.bf16 %v618_v58, %v617_v57  ;;  %v711_v60 = vld [vmem:[#allocation8] sm:$0xff]  ;;  %v712_v61 = vld [vmem:[#allocation8 + $0x8] sm:$0xff]  ;;  %v713_v62 = vld [vmem:[#allocation8 + $0x10] sm:$0xff] }
  0x8e   : > { %1168 = vmatprep.subr.bf16.mxu0 %v1167_v13  ;;  %v1219_v63 = vpack.c.bf16 %v712_v61, %v711_v60  ;;  %v714_v0 = vld [vmem:[#allocation8 + $0x18] sm:$0xff]  ;;  %v715_v2 = vld [vmem:[#allocation8 + $0x20] sm:$0xff]  ;;  %v716_v3 = vld [vmem:[#allocation8 + $0x28] sm:$0xff] }
  0x8f   : > { %v1223_v1 = vpack.c.bf16 %v714_v0, %v713_v62  ;;  %v1227_v4 = vpack.c.bf16 %v716_v3, %v715_v2  ;;  %v988_v23 = vld [vmem:[%s1828_s7] ss:$0 sm:$0xff]  ;;  %v721_v40 = vld [vmem:[#allocation8 + $0x50] sm:$0xff]  ;;  %v723_v42 = vld [vmem:[#allocation8 + $0x60] sm:$0xff] }
  0x90   : > { %1194 = vmatpush3.bf16.msra.mxu1 %v1191_v41  ;;  %v724_v43 = vld [vmem:[#allocation8 + $0x68] sm:$0xff]  ;;  %v725_v45 = vld [vmem:[#allocation8 + $0x70] sm:$0xff]  ;;  %v726_v46 = vld [vmem:[#allocation8 + $0x78] sm:$0xff] }
  0x91   : > { %1170 = vmatpush3.bf16.msra.mxu0 %v1167_v13  ;;  %1196 = vmatprep.subr.bf16.mxu1 %v1195_v44  ;;  %v990_v48 = vld [vmem:[%s1825_s4] ss:$0 sm:$0xff] }
  0x92   : > { %1172 = vmatprep.subr.bf16.mxu0 %v1171_v16  ;;  %v991_v0 = vld [vmem:[%s1827_s6] ss:$0 sm:$0xff] }
  0x94   : > { %1198 = vmatpush3.bf16.msra.mxu1 %v1195_v44  ;;  %v1243_v44 = vpack.c.bf16 %v724_v43, %v723_v42  ;;  %v992_v42 = vld [vmem:[#allocation2] ss:$0 sm:$0xff] }
  0x95   : > { %1174 = vmatpush3.bf16.msra.mxu0 %v1171_v16  ;;  %1200 = vmatprep.subr.bf16.mxu1 %v1199_v47 }
  0x96   : > { %1176 = vmatprep.subr.bf16.mxu0 %v1175_v19 }
  0x98   : > { %1202 = vmatpush3.bf16.msra.mxu1 %v1199_v47  ;;  %v1247_v47 = vpack.c.bf16 %v726_v46, %v725_v45 }
  0x99   : > { %1178 = vmatpush3.bf16.msra.mxu0 %v1175_v19  ;;  %1204 = vmatprep.subr.bf16.mxu1 %v1203_v50 }
  0x9a   : > { %1180 = vmatprep.subr.bf16.mxu0 %v1179_v22 }
  0x9c   : > { %1206 = vmatpush3.bf16.msra.mxu1 %v1203_v50 }
  0x9d   : > { %1182 = vmatpush3.bf16.msra.mxu0 %v1179_v22  ;;  %1208 = vmatprep.subr.bf16.mxu1 %v1207_v54 }
  0x9e   : > { %1184 = vmatprep.subr.bf16.mxu0 %v1183_v25 }
  0xa0   : > { %1210 = vmatpush3.bf16.msra.mxu1 %v1207_v54 }
  0xa1   : > { %1186 = vmatpush3.bf16.msra.mxu0 %v1183_v25  ;;  %1212 = vmatprep.subr.bf16.mxu1 %v1211_v56  ;;  %v989_v25 = vld [vmem:[%s1829_s8] ss:$0 sm:$0xff] }
  0xa2   : > { %1220 = vmatprep.subr.bf16.mxu0 %v1219_v63 }
  0xa4   : > { %1083 = vmatmul.mubr.f32.vlgmr.msra.gmra.mrb[0].mxu0 %v456_v26  ;;  %1214 = vmatpush3.bf16.msra.mxu1 %v1211_v56 }
  0xa5   : > { %1216 = vmatprep.subr.bf16.mxu1 %v1215_v59  ;;  %1222 = vmatpush3.bf16.msra.mxu0 %v1219_v63  ;;  %v841_v63 = vlaneseq }
  0xa6   : > { %1224 = vmatprep.subr.bf16.mxu0 %v1223_v1 }
  0xa8   : > { %1218 = vmatpush3.bf16.msra.mxu1 %v1215_v59 }
  0xa9   : > { %1226 = vmatpush3.bf16.msra.mxu0 %v1223_v1  ;;  %v842_v1 = vshrl.u32 %v841_v63, 7 }
  0xaa   : > { %1228 = vmatprep.subr.bf16.mxu0 %v1227_v4 }
  0xad   : > { %1230 = vmatpush3.bf16.msra.mxu0 %v1227_v4 }
 0x177   : > { %v1084_v31 = vpop.f32.mrb[0].mxu0 }
 0x178   : > { %v546_v32 = vpop.f32.mrb[1].mxu0  ;;  %v552_v33 = vadd.f32 %v1084_v31, %v987_v30 }
 0x179   : > { %v547_v34 = vadd.f32 %v987_v30, %v546_v32 }
 0x17a   : > { %v1778_v36 = vadd.f32 %v552_v33, %v456_v26  ;;  %v717_v33 = vld [vmem:[#allocation8 + $0x30] sm:$0xff] }
 0x17b   : > { %v1776_v35 = vadd.f32 %v547_v34, %v455_v10  ;;  %v718_v34 = vld [vmem:[#allocation8 + $0x38] sm:$0xff] }
 0x17c   : > { %v564_v38 = vmul.f32 %v1778_v36, %v1778_v36 }
 0x17d   : > { %557 = vadd.xlane.f32.xlu0 %v1776_v35  ;;  %v563_v37 = vmul.f32 %v1776_v35, %v1776_v35 }
 0x17f   : > { %565 = vadd.xlane.f32.xlu1 %v563_v37  ;;  %v719_v37 = vld [vmem:[#allocation8 + $0x40] sm:$0xff] }
 0x181   : > { %559 = vadd.xlane.f32.xlu0 %v1778_v36 }
 0x183   : > { %567 = vadd.xlane.f32.xlu1 %v564_v38  ;;  %v720_v38 = vld [vmem:[#allocation8 + $0x48] sm:$0xff] }
 0x184   : > { %v1235_v39 = vpack.c.bf16 %v720_v38, %v719_v37 }
 0x20a   : > { %v558_v5 = vpop.xlane.xlu0 %557 }
 0x20b   : > { %v561_v6 = vmul.f32 0.03125, %v558_v5 }
 0x20c   : > { %v566_v7 = vpop.xlane.xlu1 %565 }
 0x20d   : > { %v571_v8 = vmul.f32 %v561_v6, %v561_v6  ;;  %v569_v9 = vmul.f32 0.03125, %v566_v7  ;;  %v577_v21 = vsub.f32 %v1776_v35, %v561_v6  ;;  %v1231_v35 = vpack.c.bf16 %v718_v34, %v717_v33 }
 0x20e   : > { %v560_v10 = vpop.xlane.xlu0 %559  ;;  %v843_v7 = vsub.s32 0, %v842_v1 }
 0x20f   : > { %v573_v11 = vsub.f32 %v569_v9, %v571_v8  ;;  %v562_v12 = vmul.f32 0.03125, %v560_v10  ;;  %1232 = vmatprep.subr.bf16.mxu0 %v1231_v35  ;;  %v835_v9 = vld [vmem:[%s1849_s17] sm:$0x1] }
 0x210   : > { %v568_v13 = vpop.xlane.xlu1 %567  ;;  %1234 = vmatpush3.bf16.msra.mxu0 %v1231_v35 }
 0x211   : > { %v575_v14 = vmax.f32 %v573_v11, 0.0  ;;  %v572_v15 = vmul.f32 %v562_v12, %v562_v12  ;;  %v570_v16 = vmul.f32 0.03125, %v568_v13  ;;  %v578_v26 = vsub.f32 %v1778_v36, %v562_v12  ;;  %1236 = vmatprep.subr.bf16.mxu0 %v1235_v39  ;;  %v722_v36 = vld [vmem:[#allocation8 + $0x58] sm:$0xff] }
 0x212   : > { %v1239_v41 = vpack.c.bf16 %v722_v36, %v721_v40  ;;  %v844_v11 = vrot.slane %v835_v9, %v843_v7 }
 0x213   : > { %v579_v17 = vadd.f32 1e-05, %v575_v14  ;;  %v574_v18 = vsub.f32 %v570_v16, %v572_v15  ;;  %v837_v14 = vsel %vm836_vm0, %v835_v9, 0.0 }
 0x214   : > { %1238 = vmatpush3.bf16.msra.mxu0 %v1235_v39 }
 0x215   : > { %1323 = vrsqrt.f32 %v579_v17  ;;  %v576_v19 = vmax.f32 %v574_v18, 0.0  ;;  %1240 = vmatprep.subr.bf16.mxu0 %v1239_v41 }
 0x217   : > { %v580_v20 = vadd.f32 1e-05, %v576_v19 }
 0x218   : > { %1242 = vmatpush3.bf16.msra.mxu0 %v1239_v41 }
 0x219   : > { %1325 = vrsqrt.f32 %v580_v20  ;;  %1244 = vmatprep.subr.bf16.mxu0 %v1243_v44 }
 0x21c   : > { %1246 = vmatpush3.bf16.msra.mxu0 %v1243_v44 }
 0x21d   : > { %1248 = vmatprep.subr.bf16.mxu0 %v1247_v47 }
 0x21f   : > { %v1324_v22 = vpop.eup %1323 }
 0x220   : > { %v583_v24 = vmul.f32 %v1324_v22, %v577_v21  ;;  %1250 = vmatpush3.bf16.msra.mxu0 %v1247_v47 }
 0x222   : > { %v592_v27 = vmul.f32 %v988_v23, %v583_v24 }
 0x223   : > { %v1326_v28 = vpop.eup %1325 }
 0x224   : > { %v584_v29 = vmul.f32 %v1326_v28, %v578_v26  ;;  %v601_v30 = vadd.f32 %v989_v25, %v592_v27 }
 0x226   : > { %v593_v31 = vmul.f32 %v988_v23, %v584_v29  ;;  %1117 = vmatprep.mubr.f32.mxu1 %v601_v30 }
 0x228   : > { %v602_v32 = vadd.f32 %v989_v25, %v593_v31 }
 0x22a   : > { %1118 = vmatmul.mubr.f32.vlgmr.msra.gmra.mrb[0].mxu1 %v602_v32 }
 0x2fd   : > { %v1119_v49 = vpop.f32.mrb[0].mxu1 }
 0x2fe   : > { %v698_v50 = vadd.f32 %v1119_v49, %v990_v48  ;;  %v692_v51 = vpop.f32.mrb[1].mxu1 }
 0x2ff   : > { %v693_v52 = vadd.f32 %v990_v48, %v692_v51 }
 0x300   : > { %v704_v53 = vmul.f32 0.70710677, %v698_v50  ;;  %v702_v60 = vmul.f32 0.5, %v698_v50 }
 0x301   : > { %v703_v54 = vmul.f32 0.70710677, %v693_v52  ;;  %v701_v58 = vmul.f32 0.5, %v693_v52 }
 0x302   : > { %1327 = verf.f32 %v704_v53 }
 0x303   : > { %1329 = verf.f32 %v703_v54 }
 0x30c   : > { %v1328_v55 = vpop.eup %1327 }
 0x30d   : > { %v1330_v56 = vpop.eup %1329  ;;  %v708_v57 = vadd.f32 1.0, %v1328_v55 }
 0x30e   : > { %v707_v59 = vadd.f32 1.0, %v1330_v56 }
 0x30f   : > { %v710_v62 = vmul.f32 %v708_v57, %v702_v60 }
 0x310   : > { %v709_v61 = vmul.f32 %v707_v59, %v701_v58 }
 0x312   : > { %1152 = vmatprep.mubr.f32.mxu0 %v709_v61 }
 0x313   : > { %1153 = vmatmul.mubr.f32.vlgmr.msra.gmra.mrb[2].mxu0 %v710_v62 }
 0x3e6   : > { %v1154_v2 = vpop.f32.mrb[2].mxu0 }
 0x3e7   : > { %v806_v3 = vadd.f32 %v1154_v2, %v991_v0  ;;  %v800_v4 = vpop.f32.mrb[3].mxu0 }
 0x3e8   : > { %v801_v5 = vadd.f32 %v991_v0, %v800_v4 }
 0x3e9   : > { %v810_v6 = vadd.f32 %v806_v3, %v602_v32 }
 0x3ea   : > { %v809_v8 = vadd.f32 %v801_v5, %v601_v30 }
 0x3eb   : > { %813 = vadd.xlane.f32.xlu1 %v810_v6  ;;  %v818_v10 = vmul.f32 %v810_v6, %v810_v6  ;;  %v847_v15 = vmul.f32 %v844_v11, %v810_v6 }
 0x3ec   : > { %811 = vadd.xlane.f32.xlu0 %v809_v8  ;;  %v817_v12 = vmul.f32 %v809_v8, %v809_v8  ;;  %v846_v13 = vmul.f32 %v844_v11, %v809_v8 }
 0x3ef   : > { %821 = vadd.xlane.f32.xlu1 %v818_v10 }
 0x3f0   : > { %819 = vadd.xlane.f32.xlu0 %v817_v12 }
 0x3f3   : > { %848 = vadd.xlane.f32.xlu1 %v846_v13 }
 0x3f4   : > { %838 = vadd.xlane.f32.xlu0 %v837_v14 }
 0x3f8   : > { %850 = vadd.xlane.f32.xlu0 %v847_v15 }
 0x478   : > { %v814_v16 = vpop.xlane.xlu1 %813 }
 0x479   : > { %v816_v17 = vmul.f32 0.03125, %v814_v16  ;;  %v812_v18 = vpop.xlane.xlu0 %811 }
 0x47a   : > { %v815_v19 = vmul.f32 0.03125, %v812_v18 }
 0x47b   : > { %v826_v21 = vmul.f32 %v816_v17, %v816_v17 }
 0x47c   : > { %v822_v20 = vpop.xlane.xlu1 %821  ;;  %v825_v24 = vmul.f32 %v815_v19, %v815_v19 }
 0x47d   : > { %v824_v22 = vmul.f32 0.03125, %v822_v20  ;;  %v820_v23 = vpop.xlane.xlu0 %819 }
 0x47e   : > { %v823_v25 = vmul.f32 0.03125, %v820_v23 }
 0x47f   : > { %v828_v26 = vsub.f32 %v824_v22, %v826_v21 }
 0x480   : > { %v827_v27 = vsub.f32 %v823_v25, %v825_v24  ;;  %v849_v38 = vpop.xlane.xlu1 %848 }
 0x481   : > { %v830_v28 = vmax.f32 %v828_v26, 0.0  ;;  %v839_v31 = vpop.xlane.xlu0 %838 }
 0x482   : > { %v829_v29 = vmax.f32 %v827_v27, 0.0  ;;  %v855_v33 = vrot.slane %v839_v31, %v843_v7 }
 0x483   : > { %v832_v30 = vadd.f32 1e-05, %v830_v28 }
 0x484   : > { %v831_v32 = vadd.f32 1e-05, %v829_v29  ;;  %v857_v34 = vmul.f32 %v855_v33, %v816_v17  ;;  %v856_v35 = vmul.f32 %v855_v33, %v815_v19 }
 0x485   : > { %1331 = vrsqrt.f32 %v832_v30  ;;  %v851_v37 = vpop.xlane.xlu0 %850 }
 0x486   : > { %1333 = vrsqrt.f32 %v831_v32  ;;  %v859_v39 = vsub.f32 %v851_v37, %v857_v34  ;;  %v858_v36 = vsub.f32 %v849_v38, %v856_v35 }
 0x48f   : > { %v1332_v40 = vpop.eup %1331 }
 0x490   : > { %v1334_v41 = vpop.eup %1333  ;;  %v861_v43 = vmul.f32 %v1332_v40, %v859_v39 }
 0x491   : > { %v860_v44 = vmul.f32 %v1334_v41, %v858_v36 }
 0x492   : > { %v870_v46 = vadd.f32 %v992_v42, %v861_v43 }
 0x493   : > { %v869_v45 = vadd.f32 %v992_v42, %v860_v44 }
 0x494   : > { %873 = vst.msk [vmem:[%s453_s24 + $0x8] sm:$0xff] %vm871_vm1, %v870_v46 }
 0x495   : > { %872 = vst.msk [vmem:[%s453_s24] sm:$0xff] %vm871_vm1, %v869_v45 }
 0x496 PF: > { %s1852_s25 = smov %s1695_s19  ;;  %p25_p11 = scmp.ge.s32.totalorder %s1695_s19, 4  }
 0x497   : > { %s1853_s19 = smov %s1483_s20  ;;  %s1854_s20 = smov %s1487_s21 }
 0x498   : > { %s1855_s21 = smov %s1705_s10  ;;  %s1856_s22 = smov %s1852_s25 }
 0x499   :  { %27 = sbr.rel (!%p25_p11) target bundleno = 8 (0x8), region = 116 }
 0x4a0   :  { %896 = vsyncpa [#allocation4], 1 }
 0x4a1   :  { %898 = vsyncpa [#allocation4 + $0x1], 1 }
 0x4a2   :  { %899 = vsyncpa [#allocation6], 1 }
 0x4a3   :  { %900 = vsyncpa [#allocation9], 1 }

</bundles_post_ra>
